<compile_context>
chip_gen: v7x
topology: tpu7x:2x2x1
jax: 0.10.0
libtpu: 0.0.40
codegen_flags: <defaults>
</compile_context>

<pallas_src>
import numpy as np
import jax
import jax.numpy as jnp
from jax.experimental import pallas as pl
from jax.experimental.pallas import tpu as pltpu


def _round_up(x, m):
    return ((x + m - 1) // m) * m


# ----------------------------- parameter init -----------------------------

def ortho_weights(shape, scale=1.0, rng=None):
    """NumPy port of ortho_init from baselines.a2c.utils (same as the PyTorch ref)."""
    shape = tuple(shape)
    if len(shape) == 2:
        flat_shape = (shape[1], shape[0])
    else:
        raise NotImplementedError
    a = rng.normal(0.0, 1.0, flat_shape)
    u, _, v = np.linalg.svd(a, full_matrices=False)
    q = u if u.shape == flat_shape else v
    q = q.transpose().copy().reshape(shape)
    return (scale * q).astype(np.float32)


def init_params(in_size, out_size, seed=0):
    """Deterministic parameter init mirroring the module's __init__.

    PyTorch Linear weight shape is (out, in); we keep that convention here and
    transpose/fuse into the kernel layout in `prepare_kernel_params`.
    """
    rng = np.random.RandomState(seed)

    def linear_default(fan_in, fan_out):
        # PyTorch default Linear init: U(-1/sqrt(fan_in), 1/sqrt(fan_in))
        bound = 1.0 / np.sqrt(fan_in)
        w = rng.uniform(-bound, bound, (fan_out, fan_in)).astype(np.float32)
        b = rng.uniform(-bound, bound, (fan_out,)).astype(np.float32)
        return w, b

    w1, b1 = linear_default(in_size, 64)        # fc[0]
    w2, b2 = linear_default(64, 64)             # fc[2]
    _wpi, bpi = linear_default(64, out_size)    # pi (bias keeps default init)
    _wv, bv = linear_default(64, 1)             # v  (bias keeps default init)
    wpi = ortho_weights((out_size, 64), scale=0.01, rng=rng)   # pi.weight override
    wv = ortho_weights((1, 64), scale=1.0, rng=rng)            # v.weight override

    return {"w1": w1, "b1": b1, "w2": w2, "b2": b2,
            "wpi": wpi, "bpi": bpi, "wv": wv, "bv": bv}


def prepare_kernel_params(params, compute_dtype=jnp.bfloat16):
    """Transpose to (in, out) and fuse the pi|v heads into one narrow matmul."""
    w_head = np.concatenate([params["wpi"].T, params["wv"].T], axis=1)  # (64, out_size+1)
    b_head = np.concatenate([params["bpi"], params["bv"]], axis=0)      # (out_size+1,)

    return {
        "w1": jnp.asarray(params["w1"].T, dtype=compute_dtype),       # (in, 64) bf16
        "b1": jnp.asarray(params["b1"][None, :], dtype=jnp.float32),   # (1, 64)  f32
        "w2": jnp.asarray(params["w2"].T, dtype=compute_dtype),       # (64, 64) bf16
        "b2": jnp.asarray(params["b2"][None, :], dtype=jnp.float32),   # (1, 64)  f32
        "w_head": jnp.asarray(w_head, dtype=compute_dtype),            # (64, out_size+1) bf16
        "b_head": jnp.asarray(b_head[None, :], dtype=jnp.float32),     # (1, out_size+1)  f32
    }


# ------------------------------ Pallas kernel ------------------------------

def policy_teacher_kernel(x_ref, w1_ref, b1_ref, w2_ref, b2_ref,
                          wh_ref, bh_ref, out_ref):
    # x arrives f32 from HBM; cast to bf16 on the VPU (hidden under DMA/MXU slack).
    x = x_ref[...].astype(w1_ref.dtype)
    h1 = jnp.dot(x, w1_ref[...], preferred_element_type=jnp.float32) + b1_ref[...]
    h1 = jnp.maximum(h1, 0.0).astype(w2_ref.dtype)            # ReLU in f32, cast for MXU
    h2 = jnp.dot(h1, w2_ref[...], preferred_element_type=jnp.float32) + b2_ref[...]
    h2 = jnp.maximum(h2, 0.0).astype(wh_ref.dtype)            # ReLU
    # fused [pi | v] head: single MXU push, narrow (TM, out_size+1) f32 store.
    out_ref[...] = jnp.dot(h2, wh_ref[...],
                           preferred_element_type=jnp.float32) + bh_ref[...]


def policy_teacher_forward(states, kparams, in_size, out_size, *, tm=2048):
    N = states.shape[0]
    flat = states.reshape(N, in_size)          # states.view(N, in_size); stays f32

    hidden = kparams["w1"].shape[1]
    head_w = kparams["w_head"].shape[1]        # out_size + 1

    # Batch tile: multiple of 16 (bf16 sublane packing), capped at `tm`.
    # Sizing from ceil(N/2) guarantees >=2 grid steps whenever N > 16, so the
    # "parallel" axis can shard across both TensorCores on v7x.
    TM = min(tm, _round_up(max(pl.cdiv(N, 2), 1), 16))
    N_pad = _round_up(N, TM)
    if N_pad != N:
        flat = jnp.pad(flat, ((0, N_pad - N), (0, 0)))

    grid = (N_pad // TM,)

    w_itemsize = jnp.dtype(kparams["w1"].dtype).itemsize
    weight_elems = in_size * hidden + hidden * hidden + hidden * head_w
    cost = pl.CostEstimate(
        flops=2 * N_pad * weight_elems,
        transcendentals=0,
        bytes_accessed=(N_pad * in_size * 4            # x stream (f32 in HBM)
                        + N_pad * head_w * 4           # narrow f32 output
                        + weight_elems * w_itemsize    # resident bf16 weights
                        + (2 * hidden + head_w) * 4),  # f32 biases
    )

    out = pl.pallas_call(
        policy_teacher_kernel,
        out_shape=jax.ShapeDtypeStruct((N_pad, head_w), jnp.float32),
        grid=grid,
        in_specs=[
            pl.BlockSpec((TM, in_size), lambda i: (i, 0)),       # x: per-tile
            pl.BlockSpec((in_size, hidden), lambda i: (0, 0)),   # w1: resident
            pl.BlockSpec((1, hidden), lambda i: (0, 0)),         # b1: resident
            pl.BlockSpec((hidden, hidden), lambda i: (0, 0)),    # w2: resident
            pl.BlockSpec((1, hidden), lambda i: (0, 0)),         # b2: resident
            pl.BlockSpec((hidden, head_w), lambda i: (0, 0)),    # w_head: resident
            pl.BlockSpec((1, head_w), lambda i: (0, 0)),         # b_head: resident
        ],
        out_specs=pl.BlockSpec((TM, head_w), lambda i: (i, 0)),
        compiler_params=pltpu.CompilerParams(
            dimension_semantics=("parallel",)),                  # 2-TC shard on v7x
        cost_estimate=cost,
    )(flat,
      kparams["w1"], kparams["b1"],
      kparams["w2"], kparams["b2"],
      kparams["w_head"], kparams["b_head"])

    # Narrow output: these slices over (N_pad, out_size+1) f32 are near-free.
    pi_out = out[:N, :out_size]
    v_out = out[:N, out_size:out_size + 1]
    return pi_out, v_out


# --------------------------------- driver ----------------------------------

if __name__ == "__main__":
    in_size = 32
    out_size = 8
    N = 2

    # deterministic example input; "states" can be any shape whose trailing
    # dims flatten to in_size (the module does states.view(N, in_size)).
    key = jax.random.PRNGKey(0)
    states = jax.random.normal(key, (N, 4, 8), dtype=jnp.float32)  # 4*8 == in_size

    params = init_params(in_size, out_size, seed=0)
    kparams = prepare_kernel_params(params)

    pi_out, v_out = policy_teacher_forward(states, kparams, in_size, out_size)
    jax.block_until_ready((pi_out, v_out))

    # sanity check vs. plain f32 NumPy reference (PyTorch layout: x @ W.T + b)
    flat_np = np.asarray(states).reshape(N, in_size)
    h = np.maximum(flat_np @ params["w1"].T + params["b1"], 0.0)
    h = np.maximum(h @ params["w2"].T + params["b2"], 0.0)
    pi_ref = h @ params["wpi"].T + params["bpi"]
    v_ref = h @ params["wv"].T + params["bv"]

    assert pi_out.shape == (N, out_size) and v_out.shape == (N, 1)
    # bf16 matmul inputs vs f32 reference -> loosened tolerance
    np.testing.assert_allclose(np.asarray(pi_out), pi_ref, rtol=2e-2, atol=2e-2)
    np.testing.assert_allclose(np.asarray(v_out), v_ref, rtol=2e-2, atol=2e-2)

    print("KERNEL_OK")
</pallas_src>

<mosaic_0001>
module attributes {stable_mosaic.version = 11 : i64} {
  func.func @policy_teacher_kernel(%arg0: i32, %arg1: memref<16x32xf32, #tpu.memory_space<vmem>>, %arg2: memref<32x64xbf16, #tpu.memory_space<vmem>>, %arg3: memref<1x64xf32, #tpu.memory_space<vmem>>, %arg4: memref<64x64xbf16, #tpu.memory_space<vmem>>, %arg5: memref<1x64xf32, #tpu.memory_space<vmem>>, %arg6: memref<64x9xbf16, #tpu.memory_space<vmem>>, %arg7: memref<1x9xf32, #tpu.memory_space<vmem>>, %arg8: memref<16x9xf32, #tpu.memory_space<vmem>>) attributes {dimension_semantics = [#tpu.dimension_semantics<parallel>], iteration_bounds = array<i64: 1>, scalar_prefetch = 0 : i64, scratch_operands = 0 : i64, tpu.core_type = #tpu.core_type<tc>, window_params = [{transform_indices = @transform_0, window_bounds = array<i64: 16, 32>}, {pipeline_mode = #tpu.pipeline_mode<synchronous>, transform_indices = @transform_1, window_bounds = array<i64: 32, 64>}, {pipeline_mode = #tpu.pipeline_mode<synchronous>, transform_indices = @transform_2, window_bounds = array<i64: 1, 64>}, {pipeline_mode = #tpu.pipeline_mode<synchronous>, transform_indices = @transform_3, window_bounds = array<i64: 64, 64>}, {pipeline_mode = #tpu.pipeline_mode<synchronous>, transform_indices = @transform_4, window_bounds = array<i64: 1, 64>}, {pipeline_mode = #tpu.pipeline_mode<synchronous>, transform_indices = @transform_5, window_bounds = array<i64: 64, 9>}, {pipeline_mode = #tpu.pipeline_mode<synchronous>, transform_indices = @transform_6, window_bounds = array<i64: 1, 9>}, {transform_indices = @transform_7, window_bounds = array<i64: 16, 9>}]} {
    %c0 = arith.constant 0 : index
    %c0_0 = arith.constant 0 : index
    %0 = vector.load %arg1[%c0, %c0_0] : memref<16x32xf32, #tpu.memory_space<vmem>>, vector<16x32xf32>
    %1 = arith.truncf %0 : vector<16x32xf32> to vector<16x32xbf16>
    %c0_1 = arith.constant 0 : index
    %c0_2 = arith.constant 0 : index
    %2 = vector.load %arg2[%c0_1, %c0_2] : memref<32x64xbf16, #tpu.memory_space<vmem>>, vector<32x64xbf16>
    %cst = arith.constant dense<0.000000e+00> : vector<16x64xf32>
    %3 = tpu.matmul %1, %2, %cst {dimension_numbers = #tpu.dot_dimension_numbers<[1], [0], [0], [1], [0, 0, 1, 1], [], []>} : vector<16x32xbf16>, vector<32x64xbf16>, vector<16x64xf32> -> vector<16x64xf32>
    %c0_3 = arith.constant 0 : index
    %c0_4 = arith.constant 0 : index
    %4 = vector.load %arg3[%c0_3, %c0_4] : memref<1x64xf32, #tpu.memory_space<vmem>>, vector<1x64xf32>
    %5 = vector.broadcast %4 : vector<1x64xf32> to vector<16x64xf32>
    %6 = arith.addf %3, %5 : vector<16x64xf32>
    %cst_5 = arith.constant 0.000000e+00 : f32
    %7 = vector.broadcast %cst_5 : f32 to vector<16x64xf32>
    %8 = arith.maximumf %6, %7 : vector<16x64xf32>
    %9 = arith.truncf %8 : vector<16x64xf32> to vector<16x64xbf16>
    %c0_6 = arith.constant 0 : index
    %c0_7 = arith.constant 0 : index
    %10 = vector.load %arg4[%c0_6, %c0_7] : memref<64x64xbf16, #tpu.memory_space<vmem>>, vector<64x64xbf16>
    %cst_8 = arith.constant dense<0.000000e+00> : vector<16x64xf32>
    %11 = tpu.matmul %9, %10, %cst_8 {dimension_numbers = #tpu.dot_dimension_numbers<[1], [0], [0], [1], [0, 0, 1, 1], [], []>} : vector<16x64xbf16>, vector<64x64xbf16>, vector<16x64xf32> -> vector<16x64xf32>
    %c0_9 = arith.constant 0 : index
    %c0_10 = arith.constant 0 : index
    %12 = vector.load %arg5[%c0_9, %c0_10] : memref<1x64xf32, #tpu.memory_space<vmem>>, vector<1x64xf32>
    %13 = vector.broadcast %12 : vector<1x64xf32> to vector<16x64xf32>
    %14 = arith.addf %11, %13 : vector<16x64xf32>
    %cst_11 = arith.constant 0.000000e+00 : f32
    %15 = vector.broadcast %cst_11 : f32 to vector<16x64xf32>
    %16 = arith.maximumf %14, %15 : vector<16x64xf32>
    %17 = arith.truncf %16 : vector<16x64xf32> to vector<16x64xbf16>
    %c0_12 = arith.constant 0 : index
    %c0_13 = arith.constant 0 : index
    %18 = vector.load %arg6[%c0_12, %c0_13] : memref<64x9xbf16, #tpu.memory_space<vmem>>, vector<64x9xbf16>
    %cst_14 = arith.constant dense<0.000000e+00> : vector<16x9xf32>
    %19 = tpu.matmul %17, %18, %cst_14 {dimension_numbers = #tpu.dot_dimension_numbers<[1], [0], [0], [1], [0, 0, 1, 1], [], []>} : vector<16x64xbf16>, vector<64x9xbf16>, vector<16x9xf32> -> vector<16x9xf32>
    %c0_15 = arith.constant 0 : index
    %c0_16 = arith.constant 0 : index
    %20 = vector.load %arg7[%c0_15, %c0_16] : memref<1x9xf32, #tpu.memory_space<vmem>>, vector<1x9xf32>
    %21 = vector.broadcast %20 : vector<1x9xf32> to vector<16x9xf32>
    %22 = arith.addf %19, %21 : vector<16x9xf32>
    %c0_17 = arith.constant 0 : index
    %c0_18 = arith.constant 0 : index
    %23 = vector.load %arg8[%c0_17, %c0_18] : memref<16x9xf32, #tpu.memory_space<vmem>>, vector<16x9xf32>
    tpu.vector_store %arg8[%c0_17, %c0_18], %22 {strides = array<i32>} : memref<16x9xf32, #tpu.memory_space<vmem>>, vector<16x9xf32>,
    return
  }
  func.func @transform_0(%arg0: i32) -> (i32, i32) {
    %c0_i32 = arith.constant 0 : i32
    %c0_i32_0 = arith.constant 0 : i32
    return %arg0, %c0_i32 : i32, i32
  }
  func.func @transform_1(%arg0: i32) -> (i32, i32) {
    %c0_i32 = arith.constant 0 : i32
    %c0_i32_0 = arith.constant 0 : i32
    %c0_i32_1 = arith.constant 0 : i32
    return %c0_i32, %c0_i32_0 : i32, i32
  }
  func.func @transform_2(%arg0: i32) -> (i32, i32) {
    %c0_i32 = arith.constant 0 : i32
    %c0_i32_0 = arith.constant 0 : i32
    %c0_i32_1 = arith.constant 0 : i32
    return %c0_i32, %c0_i32_0 : i32, i32
  }
  func.func @transform_3(%arg0: i32) -> (i32, i32) {
    %c0_i32 = arith.constant 0 : i32
    %c0_i32_0 = arith.constant 0 : i32
    %c0_i32_1 = arith.constant 0 : i32
    return %c0_i32, %c0_i32_0 : i32, i32
  }
  func.func @transform_4(%arg0: i32) -> (i32, i32) {
    %c0_i32 = arith.constant 0 : i32
    %c0_i32_0 = arith.constant 0 : i32
    %c0_i32_1 = arith.constant 0 : i32
    return %c0_i32, %c0_i32_0 : i32, i32
  }
  func.func @transform_5(%arg0: i32) -> (i32, i32) {
    %c0_i32 = arith.constant 0 : i32
    %c0_i32_0 = arith.constant 0 : i32
    %c0_i32_1 = arith.constant 0 : i32
    return %c0_i32, %c0_i32_0 : i32, i32
  }
  func.func @transform_6(%arg0: i32) -> (i32, i32) {
    %c0_i32 = arith.constant 0 : i32
    %c0_i32_0 = arith.constant 0 : i32
    %c0_i32_1 = arith.constant 0 : i32
    return %c0_i32, %c0_i32_0 : i32, i32
  }
  func.func @transform_7(%arg0: i32) -> (i32, i32) {
    %c0_i32 = arith.constant 0 : i32
    %c0_i32_0 = arith.constant 0 : i32
    return %arg0, %c0_i32 : i32, i32
  }
}

</mosaic_0001>

<bundles_post_ra>
// kernel: tpu_custom_call.1
= control target key start
LH: loop header
LB: loop body
LE: loop exit
PB: predicated region body
PF: predicated region fallthrough
CT: control target
= control target key end

     0   :  { %12 = vsyncpa [#allocation3], 0  ;;  %s549_s0 = inlined_call_operand.vmem [shape: f32[16,32], index: 0, kind: input, shape index: {}]   ;;  %s550_s1 = inlined_call_operand.hbm [shape: bf16[32,64], index: 1, kind: input, shape index: {}]   ;;  %s551_s2 = inlined_call_operand.vmem [shape: f32[1,64], index: 2, kind: input, shape index: {}]   ;;  %s552_s3 = inlined_call_operand.vmem [shape: bf16[64,64], index: 3, kind: input, shape index: {}]   ;;  %s553_s4 = inlined_call_operand.vmem [shape: f32[1,64], index: 4, kind: input, shape index: {}]   ;;  %s554_s5 = inlined_call_operand.vmem [shape: bf16[64,9], index: 5, kind: input, shape index: {}]   ;;  %s555_s6 = inlined_call_operand.vmem [shape: f32[1,9], index: 6, kind: input, shape index: {}]   ;;  %s556_s7 = inlined_call_operand.hbm [shape: f32[16,9], index: 7, kind: output, shape index: {}]  }
   0x1   :  { %13 = vsyncpa [#allocation4], 0  ;;  %s433_s24 = smov [#allocation2]   ;;  %s385_s28 = scalar_lea.hbm %s550_s1, 256 }
   0x2   :  { %s21_s25 = sshll.u32 %s433_s24, 4  ;;  %p386_p0 = scmp.ne.s32.totalorder %s550_s1, %s385_s28  ;;  %s22_s25 = int_to_ptr.vmem [resolvable:$true] %s21_s25 }
   0x3   :  { %p389_p1 = scmp.lt.u32.totalorder %s385_s28, %s550_s1 }
   0x5   :  { %p391_p2 = pnand %p389_p1, %p386_p0 }
   0x7   :  { %394 = shalt.err (!%p391_p2)
}
   0x8   :  { %s395_s10 = scalar_lea.vmem %s22_s25, 256  ;;  %p400_p4 = scmp.lt.s32.totalorder %s22_s25, %s22_s25 }
   0x9   :  { %p396_p3 = scmp.ne.s32.totalorder %s22_s25, %s395_s10  ;;  %p401_p5 = scmp.lt.s32.totalorder %s395_s10, %s395_s10 }
   0xb   :  { %p402_p6 = por %p401_p5, %p400_p4 }
   0xd   :  { %p403_p7 = pnand %p402_p6, %p396_p3 }
   0xf   :  { %406 = shalt.err (!%p403_p7)
}
  0x10   :  { %s434_s11 = smov 64   ;;  %s435_s12 = smov 4  }
  0x11   :  { %27 = dma.hbm_to_vmem [thread:$0]  %s550_s1, 256, %s22_s25, [#allocation3], %s434_s11, %s434_s11, %s435_s12  }
  0x12   :  { %429 = dma.done.wait [#allocation3], 256  }
  0x13   :  { %430 = vsyncadd [#allocation3], 4294967040  ;;  %v436_v0 = vmov 0.0   ;;  %vm437_vm0 = vmmov 0   ;;  %v375_v1 = vld [vmem:[#allocation2] sm:$0xff]   ;;  %v376_v2 = vld [vmem:[#allocation2 + $0x8] sm:$0xff]  }
  0x14   :  { %335 = vmatprep.subr.bf16.mxu0 %v436_v0  ;;  %339 = vmatprep.mubr.msk.bf16.mxu0 %vm437_vm0, %v436_v0  ;;  %v42_v3 = vld [vmem:[%s549_s0] sm:$0xff]  ;;  %v43_v4 = vld [vmem:[%s549_s0 + $0x8] sm:$0xff]  ;;  %vm68_vm1 = vcmask 261120   ;;  %v379_v8 = vld [vmem:[%s552_s3 + $0x10] sm:$0xff]   ;;  %vm155_vm2 = vcmask 523264   ;;  %vm286_vm3 = vcmask 72704  }
  0x15   :  { %343 = vmatprep.subr.bf16.mxu1 %v436_v0  ;;  %351 = vmatprep.mubr.msk.bf16.mxu1 %vm437_vm0, %v436_v0  ;;  %v377_v5 = vld [vmem:[%s552_s3] sm:$0xff]   ;;  %v378_v6 = vld [vmem:[%s552_s3 + $0x8] sm:$0xff]   ;;  %v44_v7 = vpack.c.bf16 %v43_v4, %v42_v3  ;;  %v380_v9 = vld [vmem:[%s552_s3 + $0x18] sm:$0xff]  }
  0x16   :  { %336 = vmatpush3.bf16.msra.mxu0 %v375_v1  ;;  %344 = vmatpush3.bf16.msra.mxu1 %v377_v5  ;;  %v381_v10 = vld [vmem:[%s554_s5] sm:$0xff]   ;;  %v382_v11 = vld [vmem:[%s554_s5 + $0x8] sm:$0xff]   ;;  %v383_v22 = vld [vmem:[%s554_s5 + $0x10] sm:$0xff]  }
  0x17   :  { %337 = vmatprep.subr.bf16.mxu0 %v436_v0  ;;  %345 = vmatprep.subr.bf16.mxu1 %v436_v0  ;;  %v306_v12 = vld [vmem:[%s551_s2] ss:$0 sm:$0xff]  ;;  %v384_v23 = vld [vmem:[%s554_s5 + $0x18] sm:$0xff]   ;;  %s438_s5 = smov [#allocation5]  }
  0x18   :  { %v310_v24 = vld [vmem:[%s553_s4] ss:$0 sm:$0xff]  ;;  %s294_s14 = sshll.u32 %s438_s5, 4  ;;  %s295_s14 = int_to_ptr.vmem [resolvable:$true] %s294_s14 }
  0x19   :  { %v316_v34 = vld [vmem:[%s555_s6] ss:$0 sm:$0xff]  ;;  %s407_s4 = scalar_lea.vmem %s295_s14, 256  ;;  %p412_p9 = scmp.lt.s32.totalorder %s295_s14, %s295_s14 }
  0x1a   :  { %338 = vmatpush3.bf16.msra.mxu0 %v376_v2  ;;  %346 = vmatpush3.bf16.msra.mxu1 %v378_v6  ;;  %p408_p8 = scmp.ne.s32.totalorder %s295_s14, %s407_s4  ;;  %p413_p10 = scmp.lt.s32.totalorder %s407_s4, %s407_s4 }
  0x1b   :  { %355 = vmatprep.subr.bf16.mxu0 %v436_v0  ;;  %347 = vmatprep.subr.bf16.mxu1 %v436_v0 }
  0x1c   :  { %p414_p11 = por %p413_p10, %p412_p9 }
  0x1d   :  { %340 = vmatmul.mubr.msk.bf16.vlgmr.msra.gmra.mrb[0].mxu0 %vm68_vm1, %v44_v7 }
  0x1e   :  { %363 = vmatprep.mubr.msk.bf16.mxu0 %vm437_vm0, %v436_v0  ;;  %348 = vmatpush3.bf16.msra.mxu1 %v379_v8  ;;  %p415_p12 = pnand %p414_p11, %p408_p8 }
  0x1f   :  { %349 = vmatprep.subr.bf16.mxu1 %v436_v0  ;;  %356 = vmatpush3.bf16.msra.mxu0 %v381_v10 }
  0x20   :  { %357 = vmatprep.subr.bf16.mxu0 %v436_v0 }
  0x22   :  { %350 = vmatpush3.bf16.msra.mxu1 %v380_v9 }
  0x23   :  { %358 = vmatpush3.bf16.msra.mxu0 %v382_v11 }
  0x24   :  { %359 = vmatprep.subr.bf16.mxu0 %v436_v0 }
  0x27   :  { %360 = vmatpush3.bf16.msra.mxu0 %v383_v22 }
  0x28   :  { %361 = vmatprep.subr.bf16.mxu0 %v436_v0 }
  0x2b   :  { %362 = vmatpush3.bf16.msra.mxu0 %v384_v23 }
  0xf0   :  { %v106_v13 = vpop.f32.mrb[0].mxu0 }
  0xf1   :  { %v107_v14 = vadd.f32 %v306_v12, %v106_v13  ;;  %v341_v15 = vpop.f32.mrb[1].mxu0 }
  0xf2   :  { %v109_v16 = vpop.f32.mrb[2].mxu0 }
  0xf3   :  { %v110_v17 = vadd.f32 %v306_v12, %v109_v16  ;;  %v342_v18 = vpop.f32.mrb[3].mxu0  ;;  %v113_v19 = vmax.f32 %v107_v14, 0.0 }
  0xf5   :  { %v114_v20 = vmax.f32 %v110_v17, 0.0 }
  0xf7   :  { %v115_v21 = vpack.c.bf16 %v114_v20, %v113_v19 }
  0xf9   :  { %352 = vmatmul.mubr.msk.bf16.vlgmr.msra.gmra.mrb[0].mxu1 %vm155_vm2, %v115_v21 }
 0x1cc   :  { %v193_v25 = vpop.f32.mrb[0].mxu1 }
 0x1cd   :  { %v194_v26 = vadd.f32 %v310_v24, %v193_v25  ;;  %v353_v27 = vpop.f32.mrb[1].mxu1 }
 0x1ce   :  { %v196_v28 = vpop.f32.mrb[2].mxu1 }
 0x1cf   :  { %v197_v29 = vadd.f32 %v310_v24, %v196_v28  ;;  %v354_v30 = vpop.f32.mrb[3].mxu1  ;;  %v200_v31 = vmax.f32 %v194_v26, 0.0 }
 0x1d1   :  { %v201_v32 = vmax.f32 %v197_v29, 0.0 }
 0x1d3   :  { %v202_v33 = vpack.c.bf16 %v201_v32, %v200_v31 }
 0x1d5   :  { %364 = vmatmul.mubr.msk.bf16.vlgmr.msra.gmra.mrb[4].mxu0 %vm155_vm2, %v202_v33 }
 0x2a8   :  { %v279_v35 = vpop.f32.mrb[4].mxu0 }
 0x2a9   :  { %v280_v36 = vadd.f32 %v316_v34, %v279_v35  ;;  %v365_v37 = vpop.f32.mrb[5].mxu0 }
 0x2aa   :  { %v282_v38 = vpop.f32.mrb[6].mxu0 }
 0x2ab   :  { %287 = vst.msk [vmem:[#allocation5] sm:$0xff] %vm286_vm3, %v280_v36  ;;  %v283_v39 = vadd.f32 %v316_v34, %v282_v38  ;;  %v366_v40 = vpop.f32.mrb[7].mxu0 }
 0x2ad   :  { %288 = vst.msk [vmem:[#allocation5 + $0x8] sm:$0xff] %vm286_vm3, %v283_v39 }
 0x2ae   :  { %418 = shalt.err (!%p415_p12)
}
 0x2af   :  { %s419_s16 = scalar_lea.hbm %s556_s7, 256 }
 0x2b0   :  { %p420_p13 = scmp.ne.s32.totalorder %s556_s7, %s419_s16  ;;  %p423_p0 = scmp.lt.u32.totalorder %s419_s16, %s556_s7 }
 0x2b2   :  { %p425_p1 = pnand %p423_p0, %p420_p13 }
 0x2b4   :  { %428 = shalt.err (!%p425_p1)
}
 0x2b5   :  { %s439_s20 = smov 128   ;;  %s440_s21 = smov 8  }
 0x2b6   :  { %300 = dma.vmem_to_hbm [thread:$0]  %s295_s14, 256, %s556_s7, [#allocation4], %s439_s20, %s439_s20, %s440_s21  }
 0x2b7   :  { %431 = dma.done.wait [#allocation4], 256  }
 0x2b8   :  { %432 = vsyncadd [#allocation4], 4294967040 }
 0x2b9   :  { %304 = vsyncpa [#allocation3], 1 }
 0x2ba   :  { %305 = vsyncpa [#allocation4], 1 }

</bundles_post_ra>
